<compile_context>
chip_gen: v7x
topology: tpu7x:2x2x1
jax: 0.10.0
libtpu: 0.0.40
codegen_flags: <defaults>
</compile_context>

<pallas_src>
import jax
import jax.numpy as jnp
from jax.experimental import pallas as pl
from jax.experimental.pallas import tpu as pltpu

LANE = 128
SUBLANE = 8
TN_TARGET = 2048   # lane-tile width target (multiple of 128)
TB_TARGET = 64     # row-tile height target (multiple of 8)


def _round_up(x, m):
    return (x + m - 1) // m * m


def _choose_row_split(b, n, max_rows=128):
    """Largest power-of-two K with n % K == 0, (n//K) % LANE == 0, b*K <= max_rows.

    Splitting each batch row into K sub-rows fills the 8 sublanes of a vreg
    (and gives the row grid axis something to parallelize over on v7x).
    """
    k = 1
    while True:
        nk = k * 2
        if n % nk != 0:
            break
        if (n // nk) % LANE != 0:
            break
        if b * nk > max_rows:
            break
        k = nk
    return k


def _dice_ce_kernel(p_ref, y_ref,
                    inter_ref, psum_ref, lsum_ref, bsum_ref,
                    acc_inter, acc_p, acc_y, acc_b):
    """Grid = (row_tiles, col_tiles); col axis is the reduction axis.

    Per-tile: pure elementwise accumulation (VPU) into f32 scratch.
    Epilogue (last col tile): one cross-lane reduction per quantity, then the
    four (TB, 1) partial-sum outputs are written.
    """
    k = pl.program_id(1)

    @pl.when(k == 0)
    def _():
        acc_inter[...] = jnp.zeros_like(acc_inter)
        acc_p[...] = jnp.zeros_like(acc_p)
        acc_y[...] = jnp.zeros_like(acc_y)
        acc_b[...] = jnp.zeros_like(acc_b)

    p = p_ref[...].astype(jnp.float32)
    y = y_ref[...].astype(jnp.float32)

    acc_inter[...] += p * y
    acc_p[...] += p
    acc_y[...] += y

    # nn.BCELoss semantics: -(y*log(p) + (1-y)*log(1-p)), each log term clamped
    # at -100 (PyTorch's internal clamp). Zero-padded elements contribute 0.
    # TODO(synk): if callers can supply pre-sigmoid logits, fuse sigmoid+BCE
    # (softplus form) here to halve EUP transcendentals.
    log_p = jnp.maximum(jnp.log(p), -100.0)
    log_1mp = jnp.maximum(jnp.log1p(-p), -100.0)
    acc_b[...] += -(y * log_p + (1.0 - y) * log_1mp)

    @pl.when(k == pl.num_programs(1) - 1)
    def _():
        inter_ref[...] = jnp.sum(acc_inter[...], axis=1, keepdims=True)
        psum_ref[...] = jnp.sum(acc_p[...], axis=1, keepdims=True)
        lsum_ref[...] = jnp.sum(acc_y[...], axis=1, keepdims=True)
        bsum_ref[...] = jnp.sum(acc_b[...], axis=1, keepdims=True)


def dice_ce_loss(pred, label):
    """pred, label: NCHW arrays, pred in (0, 1). Returns scalar f32 loss."""
    assert pred.shape == label.shape
    b = pred.shape[0]
    n = 1
    for d in pred.shape[1:]:
        n *= d

    # --- sublane packing: (B, N) -> (R, Ncol) with R = B*K --------------------
    k_fill = _choose_row_split(b, n)
    r = b * k_fill
    ncol = n // k_fill

    # Keep native dtypes; the kernel casts to f32 internally.
    p2 = pred.reshape(r, ncol)
    y2 = label.reshape(r, ncol)

    # --- tiling / padding -----------------------------------------------------
    rp = _round_up(r, SUBLANE)
    tb = min(rp, TB_TARGET)
    rp = _round_up(rp, tb)

    ncol_p = _round_up(ncol, LANE)
    tn = min(ncol_p, TN_TARGET)
    ncol_p = _round_up(ncol_p, tn)

    if (rp, ncol_p) != (r, ncol):
        pad = ((0, rp - r), (0, ncol_p - ncol))
        p2 = jnp.pad(p2, pad)
        y2 = jnp.pad(y2, pad)

    grid = (rp // tb, ncol_p // tn)

    bytes_in = rp * ncol_p * (p2.dtype.itemsize + y2.dtype.itemsize)
    cost = pl.CostEstimate(
        flops=9 * rp * ncol_p,
        transcendentals=2 * rp * ncol_p,
        bytes_accessed=bytes_in + 4 * rp * 4,
    )

    out_sds = jax.ShapeDtypeStruct((rp, 1), jnp.float32)
    out_spec = pl.BlockSpec((tb, 1), lambda i, k: (i, 0))
    in_spec = pl.BlockSpec((tb, tn), lambda i, k: (i, k))

    inter_r, psum_r, lsum_r, bsum_r = pl.pallas_call(
        _dice_ce_kernel,
        out_shape=(out_sds, out_sds, out_sds, out_sds),
        grid_spec=pltpu.PrefetchScalarGridSpec(
            num_scalar_prefetch=0,
            grid=grid,
            in_specs=[in_spec, in_spec],
            out_specs=(out_spec, out_spec, out_spec, out_spec),
            scratch_shapes=[pltpu.VMEM((tb, tn), jnp.float32)] * 4,
        ),
        compiler_params=pltpu.CompilerParams(
            dimension_semantics=("parallel", "arbitrary"),
            vmem_limit_bytes=32 * 1024 * 1024,
        ),
        cost_estimate=cost,
    )(p2, y2)

    # --- scalar glue (tiny) ---------------------------------------------------
    inter = inter_r[:r, 0].reshape(b, k_fill).sum(axis=1)
    psum = psum_r[:r, 0].reshape(b, k_fill).sum(axis=1)
    lsum = lsum_r[:r, 0].reshape(b, k_fill).sum(axis=1)
    bce_sum = bsum_r[:r, 0].sum()

    smooth = 100.0
    n_dice_eff = (2.0 * inter + smooth) / (psum + lsum + smooth)
    dice_loss = 1.0 - jnp.sum(n_dice_eff) / b
    bce_loss = bce_sum / (b * n)

    return dice_loss + bce_loss


def _reference(pred, label):
    """Pure-JAX reference for a sanity check."""
    b = pred.shape[0]
    p = pred.reshape(b, -1).astype(jnp.float32)
    y = label.reshape(b, -1).astype(jnp.float32)
    smooth = 100.0
    inter = jnp.sum(p * y, axis=1)
    n_dice = (2.0 * inter + smooth) / (jnp.sum(p, axis=1) + jnp.sum(y, axis=1) + smooth)
    dice = 1.0 - jnp.sum(n_dice) / b
    log_p = jnp.maximum(jnp.log(p), -100.0)
    log_1mp = jnp.maximum(jnp.log1p(-p), -100.0)
    bce = jnp.mean(-(y * log_p + (1.0 - y) * log_1mp))
    return dice + bce


if __name__ == "__main__":
    key = jax.random.PRNGKey(0)
    k1, k2 = jax.random.split(key)

    B, C, H, W = 2, 4, 16, 16
    # pred must be probabilities for BCELoss; squash logits through sigmoid.
    pred = jax.nn.sigmoid(jax.random.normal(k1, (B, C, H, W), dtype=jnp.float32))
    label = (jax.random.uniform(k2, (B, C, H, W)) > 0.5).astype(jnp.float32)

    loss = jax.block_until_ready(dice_ce_loss(pred, label))
    ref = jax.block_until_ready(_reference(pred, label))
    assert jnp.allclose(loss, ref, atol=1e-5, rtol=1e-5), (loss, ref)

    print("KERNEL_OK")
</pallas_src>

<mosaic_0001>
module attributes {stable_mosaic.version = 11 : i64} {
  func.func @_dice_ce_kernel(%arg0: i32, %arg1: i32, %arg2: memref<16x128xf32, #tpu.memory_space<vmem>>, %arg3: memref<16x128xf32, #tpu.memory_space<vmem>>, %arg4: memref<16x1xf32, #tpu.memory_space<vmem>>, %arg5: memref<16x1xf32, #tpu.memory_space<vmem>>, %arg6: memref<16x1xf32, #tpu.memory_space<vmem>>, %arg7: memref<16x1xf32, #tpu.memory_space<vmem>>, %arg8: memref<16x128xf32, #tpu.memory_space<vmem>>, %arg9: memref<16x128xf32, #tpu.memory_space<vmem>>, %arg10: memref<16x128xf32, #tpu.memory_space<vmem>>, %arg11: memref<16x128xf32, #tpu.memory_space<vmem>>) attributes {dimension_semantics = [#tpu.dimension_semantics<parallel>, #tpu.dimension_semantics<arbitrary>], iteration_bounds = array<i64: 1, 1>, scalar_prefetch = 0 : i64, scratch_operands = 4 : i64, tpu.core_type = #tpu.core_type<tc>, window_params = [{transform_indices = @transform_0, window_bounds = array<i64: 16, 128>}, {transform_indices = @transform_1, window_bounds = array<i64: 16, 128>}, {transform_indices = @transform_2, window_bounds = array<i64: 16, 1>}, {transform_indices = @transform_3, window_bounds = array<i64: 16, 1>}, {transform_indices = @transform_4, window_bounds = array<i64: 16, 1>}, {transform_indices = @transform_5, window_bounds = array<i64: 16, 1>}]} {
    %c0_i32 = arith.constant 0 : i32
    %0 = arith.cmpi eq, %arg1, %c0_i32 : i32
    %1 = arith.extui %0 : i1 to i32
    %c0_i32_0 = arith.constant 0 : i32
    %2 = arith.cmpi ne, %1, %c0_i32_0 : i32
    scf.if %2 {
      %cst_26 = arith.constant 0.000000e+00 : f32
      %36 = vector.broadcast %cst_26 : f32 to vector<16x128xf32>
      %c0_27 = arith.constant 0 : index
      %c0_28 = arith.constant 0 : index
      %37 = vector.load %arg8[%c0_27, %c0_28] : memref<16x128xf32, #tpu.memory_space<vmem>>, vector<16x128xf32>
      tpu.vector_store %arg8[%c0_27, %c0_28], %36 {strides = array<i32>} : memref<16x128xf32, #tpu.memory_space<vmem>>, vector<16x128xf32>,
      %cst_29 = arith.constant 0.000000e+00 : f32
      %38 = vector.broadcast %cst_29 : f32 to vector<16x128xf32>
      %c0_30 = arith.constant 0 : index
      %c0_31 = arith.constant 0 : index
      %39 = vector.load %arg9[%c0_30, %c0_31] : memref<16x128xf32, #tpu.memory_space<vmem>>, vector<16x128xf32>
      tpu.vector_store %arg9[%c0_30, %c0_31], %38 {strides = array<i32>} : memref<16x128xf32, #tpu.memory_space<vmem>>, vector<16x128xf32>,
      %cst_32 = arith.constant 0.000000e+00 : f32
      %40 = vector.broadcast %cst_32 : f32 to vector<16x128xf32>
      %c0_33 = arith.constant 0 : index
      %c0_34 = arith.constant 0 : index
      %41 = vector.load %arg10[%c0_33, %c0_34] : memref<16x128xf32, #tpu.memory_space<vmem>>, vector<16x128xf32>
      tpu.vector_store %arg10[%c0_33, %c0_34], %40 {strides = array<i32>} : memref<16x128xf32, #tpu.memory_space<vmem>>, vector<16x128xf32>,
      %cst_35 = arith.constant 0.000000e+00 : f32
      %42 = vector.broadcast %cst_35 : f32 to vector<16x128xf32>
      %c0_36 = arith.constant 0 : index
      %c0_37 = arith.constant 0 : index
      %43 = vector.load %arg11[%c0_36, %c0_37] : memref<16x128xf32, #tpu.memory_space<vmem>>, vector<16x128xf32>
      tpu.vector_store %arg11[%c0_36, %c0_37], %42 {strides = array<i32>} : memref<16x128xf32, #tpu.memory_space<vmem>>, vector<16x128xf32>,
    } else {
    }
    %c0 = arith.constant 0 : index
    %c0_1 = arith.constant 0 : index
    %3 = vector.load %arg2[%c0, %c0_1] : memref<16x128xf32, #tpu.memory_space<vmem>>, vector<16x128xf32>
    %c0_2 = arith.constant 0 : index
    %c0_3 = arith.constant 0 : index
    %4 = vector.load %arg3[%c0_2, %c0_3] : memref<16x128xf32, #tpu.memory_space<vmem>>, vector<16x128xf32>
    %c0_4 = arith.constant 0 : index
    %c0_5 = arith.constant 0 : index
    %5 = vector.load %arg8[%c0_4, %c0_5] : memref<16x128xf32, #tpu.memory_space<vmem>>, vector<16x128xf32>
    %6 = arith.mulf %3, %4 : vector<16x128xf32>
    %7 = arith.addf %5, %6 : vector<16x128xf32>
    %c0_6 = arith.constant 0 : index
    %c0_7 = arith.constant 0 : index
    %8 = vector.load %arg8[%c0_6, %c0_7] : memref<16x128xf32, #tpu.memory_space<vmem>>, vector<16x128xf32>
    tpu.vector_store %arg8[%c0_6, %c0_7], %7 {strides = array<i32>} : memref<16x128xf32, #tpu.memory_space<vmem>>, vector<16x128xf32>,
    %c0_8 = arith.constant 0 : index
    %c0_9 = arith.constant 0 : index
    %9 = vector.load %arg9[%c0_8, %c0_9] : memref<16x128xf32, #tpu.memory_space<vmem>>, vector<16x128xf32>
    %10 = arith.addf %9, %3 : vector<16x128xf32>
    %c0_10 = arith.constant 0 : index
    %c0_11 = arith.constant 0 : index
    %11 = vector.load %arg9[%c0_10, %c0_11] : memref<16x128xf32, #tpu.memory_space<vmem>>, vector<16x128xf32>
    tpu.vector_store %arg9[%c0_10, %c0_11], %10 {strides = array<i32>} : memref<16x128xf32, #tpu.memory_space<vmem>>, vector<16x128xf32>,
    %c0_12 = arith.constant 0 : index
    %c0_13 = arith.constant 0 : index
    %12 = vector.load %arg10[%c0_12, %c0_13] : memref<16x128xf32, #tpu.memory_space<vmem>>, vector<16x128xf32>
    %13 = arith.addf %12, %4 : vector<16x128xf32>
    %c0_14 = arith.constant 0 : index
    %c0_15 = arith.constant 0 : index
    %14 = vector.load %arg10[%c0_14, %c0_15] : memref<16x128xf32, #tpu.memory_space<vmem>>, vector<16x128xf32>
    tpu.vector_store %arg10[%c0_14, %c0_15], %13 {strides = array<i32>} : memref<16x128xf32, #tpu.memory_space<vmem>>, vector<16x128xf32>,
    %15 = math.log %3 : vector<16x128xf32>
    %cst = arith.constant -1.000000e+02 : f32
    %16 = vector.broadcast %cst : f32 to vector<16x128xf32>
    %17 = arith.maximumf %15, %16 : vector<16x128xf32>
    %cst_16 = arith.constant 0.000000e+00 : f32
    %18 = vector.broadcast %cst_16 : f32 to vector<16x128xf32>
    %19 = arith.subf %18, %3 : vector<16x128xf32>
    %20 = math.log1p %19 : vector<16x128xf32>
    %cst_17 = arith.constant -1.000000e+02 : f32
    %21 = vector.broadcast %cst_17 : f32 to vector<16x128xf32>
    %22 = arith.maximumf %20, %21 : vector<16x128xf32>
    %c0_18 = arith.constant 0 : index
    %c0_19 = arith.constant 0 : index
    %23 = vector.load %arg11[%c0_18, %c0_19] : memref<16x128xf32, #tpu.memory_space<vmem>>, vector<16x128xf32>
    %24 = arith.mulf %4, %17 : vector<16x128xf32>
    %cst_20 = arith.constant 1.000000e+00 : f32
    %25 = vector.broadcast %cst_20 : f32 to vector<16x128xf32>
    %26 = arith.subf %25, %4 : vector<16x128xf32>
    %27 = arith.mulf %26, %22 : vector<16x128xf32>
    %28 = arith.addf %24, %27 : vector<16x128xf32>
    %cst_21 = arith.constant 0.000000e+00 : f32
    %29 = vector.broadcast %cst_21 : f32 to vector<16x128xf32>
    %30 = arith.subf %29, %28 : vector<16x128xf32>
    %31 = arith.addf %23, %30 : vector<16x128xf32>
    %c0_22 = arith.constant 0 : index
    %c0_23 = arith.constant 0 : index
    %32 = vector.load %arg11[%c0_22, %c0_23] : memref<16x128xf32, #tpu.memory_space<vmem>>, vector<16x128xf32>
    tpu.vector_store %arg11[%c0_22, %c0_23], %31 {strides = array<i32>} : memref<16x128xf32, #tpu.memory_space<vmem>>, vector<16x128xf32>,
    %c0_i32_24 = arith.constant 0 : i32
    %33 = arith.cmpi eq, %arg1, %c0_i32_24 : i32
    %34 = arith.extui %33 : i1 to i32
    %c0_i32_25 = arith.constant 0 : i32
    %35 = arith.cmpi ne, %34, %c0_i32_25 : i32
    scf.if %35 {
      %c0_26 = arith.constant 0 : index
      %c0_27 = arith.constant 0 : index
      %36 = vector.load %arg8[%c0_26, %c0_27] : memref<16x128xf32, #tpu.memory_space<vmem>>, vector<16x128xf32>
      %cst_28 = arith.constant dense<0.000000e+00> : vector<16xf32>
      %37 = vector.multi_reduction <add>, %36, %cst_28 [1] : vector<16x128xf32> to vector<16xf32>
      %38 = vector.shape_cast %37 : vector<16xf32> to vector<16x1xf32>
      %c0_29 = arith.constant 0 : index
      %c0_30 = arith.constant 0 : index
      %39 = vector.load %arg4[%c0_29, %c0_30] : memref<16x1xf32, #tpu.memory_space<vmem>>, vector<16x1xf32>
      tpu.vector_store %arg4[%c0_29, %c0_30], %38 {strides = array<i32>} : memref<16x1xf32, #tpu.memory_space<vmem>>, vector<16x1xf32>,
      %c0_31 = arith.constant 0 : index
      %c0_32 = arith.constant 0 : index
      %40 = vector.load %arg9[%c0_31, %c0_32] : memref<16x128xf32, #tpu.memory_space<vmem>>, vector<16x128xf32>
      %cst_33 = arith.constant dense<0.000000e+00> : vector<16xf32>
      %41 = vector.multi_reduction <add>, %40, %cst_33 [1] : vector<16x128xf32> to vector<16xf32>
      %42 = vector.shape_cast %41 : vector<16xf32> to vector<16x1xf32>
      %c0_34 = arith.constant 0 : index
      %c0_35 = arith.constant 0 : index
      %43 = vector.load %arg5[%c0_34, %c0_35] : memref<16x1xf32, #tpu.memory_space<vmem>>, vector<16x1xf32>
      tpu.vector_store %arg5[%c0_34, %c0_35], %42 {strides = array<i32>} : memref<16x1xf32, #tpu.memory_space<vmem>>, vector<16x1xf32>,
      %c0_36 = arith.constant 0 : index
      %c0_37 = arith.constant 0 : index
      %44 = vector.load %arg10[%c0_36, %c0_37] : memref<16x128xf32, #tpu.memory_space<vmem>>, vector<16x128xf32>
      %cst_38 = arith.constant dense<0.000000e+00> : vector<16xf32>
      %45 = vector.multi_reduction <add>, %44, %cst_38 [1] : vector<16x128xf32> to vector<16xf32>
      %46 = vector.shape_cast %45 : vector<16xf32> to vector<16x1xf32>
      %c0_39 = arith.constant 0 : index
      %c0_40 = arith.constant 0 : index
      %47 = vector.load %arg6[%c0_39, %c0_40] : memref<16x1xf32, #tpu.memory_space<vmem>>, vector<16x1xf32>
      tpu.vector_store %arg6[%c0_39, %c0_40], %46 {strides = array<i32>} : memref<16x1xf32, #tpu.memory_space<vmem>>, vector<16x1xf32>,
      %c0_41 = arith.constant 0 : index
      %c0_42 = arith.constant 0 : index
      %48 = vector.load %arg11[%c0_41, %c0_42] : memref<16x128xf32, #tpu.memory_space<vmem>>, vector<16x128xf32>
      %cst_43 = arith.constant dense<0.000000e+00> : vector<16xf32>
      %49 = vector.multi_reduction <add>, %48, %cst_43 [1] : vector<16x128xf32> to vector<16xf32>
      %50 = vector.shape_cast %49 : vector<16xf32> to vector<16x1xf32>
      %c0_44 = arith.constant 0 : index
      %c0_45 = arith.constant 0 : index
      %51 = vector.load %arg7[%c0_44, %c0_45] : memref<16x1xf32, #tpu.memory_space<vmem>>, vector<16x1xf32>
      tpu.vector_store %arg7[%c0_44, %c0_45], %50 {strides = array<i32>} : memref<16x1xf32, #tpu.memory_space<vmem>>, vector<16x1xf32>,
    } else {
    }
    return
  }
  func.func @transform_0(%arg0: i32, %arg1: i32) -> (i32, i32) {
    %c0_i32 = arith.constant 0 : i32
    return %arg0, %arg1 : i32, i32
  }
  func.func @transform_1(%arg0: i32, %arg1: i32) -> (i32, i32) {
    %c0_i32 = arith.constant 0 : i32
    return %arg0, %arg1 : i32, i32
  }
  func.func @transform_2(%arg0: i32, %arg1: i32) -> (i32, i32) {
    %c0_i32 = arith.constant 0 : i32
    %c0_i32_0 = arith.constant 0 : i32
    return %arg0, %c0_i32 : i32, i32
  }
  func.func @transform_3(%arg0: i32, %arg1: i32) -> (i32, i32) {
    %c0_i32 = arith.constant 0 : i32
    %c0_i32_0 = arith.constant 0 : i32
    return %arg0, %c0_i32 : i32, i32
  }
  func.func @transform_4(%arg0: i32, %arg1: i32) -> (i32, i32) {
    %c0_i32 = arith.constant 0 : i32
    %c0_i32_0 = arith.constant 0 : i32
    return %arg0, %c0_i32 : i32, i32
  }
  func.func @transform_5(%arg0: i32, %arg1: i32) -> (i32, i32) {
    %c0_i32 = arith.constant 0 : i32
    %c0_i32_0 = arith.constant 0 : i32
    return %arg0, %c0_i32 : i32, i32
  }
}

</mosaic_0001>

<bundles_post_ra>
// kernel: tpu_custom_call.1
= control target key start
LH: loop header
LB: loop body
LE: loop exit
PB: predicated region body
PF: predicated region fallthrough
CT: control target
= control target key end

     0   :  { %11 = vsyncpa [#allocation7], 0  ;;  %s327_s0 = inlined_call_operand.hbm [shape: f32[16,128], index: 0, kind: input, shape index: {}]   ;;  %s328_s1 = inlined_call_operand.hbm [shape: f32[16,128], index: 1, kind: input, shape index: {}]   ;;  %s329_s2 = inlined_call_operand.vmem [shape: f32[16,1], index: 2, kind: output, shape index: {0}]   ;;  %s330_s3 = inlined_call_operand.vmem [shape: f32[16,1], index: 3, kind: output, shape index: {1}]   ;;  %s331_s4 = inlined_call_operand.vmem [shape: f32[16,1], index: 4, kind: output, shape index: {2}]   ;;  %s332_s5 = inlined_call_operand.vmem [shape: f32[16,1], index: 5, kind: output, shape index: {3}]  }
   0x1   :  { %12 = vsyncpa [#allocation9], 0  ;;  %s237_s18 = smov [#allocation6]   ;;  %s189_s22 = scalar_lea.hbm %s327_s0, 256 }
   0x2   :  { %s18_s19 = sshll.u32 %s237_s18, 4  ;;  %p190_p0 = scmp.ne.s32.totalorder %s327_s0, %s189_s22  ;;  %s19_s19 = int_to_ptr.vmem [resolvable:$true] %s18_s19 }
   0x3   :  { %p193_p1 = scmp.lt.u32.totalorder %s189_s22, %s327_s0 }
   0x5   :  { %p195_p2 = pnand %p193_p1, %p190_p0 }
   0x7   :  { %198 = shalt.err (!%p195_p2)
}
   0x8   :  { %s199_s27 = scalar_lea.vmem %s19_s19, 256  ;;  %p204_p4 = scmp.lt.s32.totalorder %s19_s19, %s19_s19 }
   0x9   :  { %p200_p3 = scmp.ne.s32.totalorder %s19_s19, %s199_s27  ;;  %p205_p5 = scmp.lt.s32.totalorder %s199_s27, %s199_s27 }
   0xb   :  { %p206_p6 = por %p205_p5, %p204_p4 }
   0xd   :  { %p207_p7 = pnand %p206_p6, %p200_p3 }
   0xf   :  { %210 = shalt.err (!%p207_p7)
}
  0x10   :  { %s238_s28 = smov 128   ;;  %s239_s29 = smov 8  }
  0x11   :  { %24 = dma.hbm_to_vmem [thread:$0]  %s327_s0, 256, %s19_s19, [#allocation7], %s238_s28, %s238_s28, %s239_s29  }
  0x12   :  { %s240_s7 = smov [#allocation8]   ;;  %s211_s11 = scalar_lea.hbm %s328_s1, 256 }
  0x13   :  { %s30_s8 = sshll.u32 %s240_s7, 4  ;;  %p212_p8 = scmp.ne.s32.totalorder %s328_s1, %s211_s11  ;;  %s31_s8 = int_to_ptr.vmem [resolvable:$true] %s30_s8 }
  0x14   :  { %p215_p9 = scmp.lt.u32.totalorder %s211_s11, %s328_s1 }
  0x16   :  { %p217_p10 = pnand %p215_p9, %p212_p8 }
  0x18   :  { %220 = shalt.err (!%p217_p10)
}
  0x19   :  { %s221_s16 = scalar_lea.vmem %s31_s8, 256  ;;  %p226_p12 = scmp.lt.s32.totalorder %s31_s8, %s31_s8 }
  0x1a   :  { %p222_p11 = scmp.ne.s32.totalorder %s31_s8, %s221_s16  ;;  %p227_p13 = scmp.lt.s32.totalorder %s221_s16, %s221_s16 }
  0x1c   :  { %p228_p0 = por %p227_p13, %p226_p12 }
  0x1e   :  { %p229_p1 = pnand %p228_p0, %p222_p11 }
  0x20   :  { %232 = shalt.err (!%p229_p1)
}
  0x21   :  { %36 = dma.hbm_to_vmem [thread:$0]  %s328_s1, 256, %s31_s8, [#allocation9], %s238_s28, %s238_s28, %s239_s29  }
  0x22   :  { %233 = dma.done.wait [#allocation7], 256  }
  0x23   :  { %234 = vsyncadd [#allocation7], 4294967040 }
  0x24   :  { %235 = dma.done.wait [#allocation9], 256  }
  0x25   :  { %236 = vsyncadd [#allocation9], 4294967040  ;;  %v57_v0 = vld [vmem:[#allocation8] sm:$0xff]  ;;  %v55_v1 = vld [vmem:[#allocation6] sm:$0xff]  ;;  %vm132_vm2 = vcmask 7168  }
  0x26   :  { %v56_v2 = vld [vmem:[#allocation6 + $0x8] sm:$0xff]  ;;  %145 = vadd.xlane.f32.xlu0 %v57_v0  ;;  %137 = vadd.xlane.f32.xlu1 %v55_v1  ;;  %181 = vlog2.f32 %v55_v1  ;;  %v85_v3 = vsub.f32 0.0, %v55_v1  ;;  %v61_v5 = vmul.f32 %v57_v0, %v55_v1  ;;  %v58_v8 = vld [vmem:[#allocation8 + $0x8] sm:$0xff]  ;;  %v111_v30 = vsub.f32 1.0, %v57_v0 }
  0x27   :  { %v86_v4 = vsub.f32 0.0, %v56_v2  ;;  %183 = vlog2.f32 %v56_v2  ;;  %v62_v9 = vmul.f32 %v58_v8, %v56_v2  ;;  %v112_v27 = vsub.f32 1.0, %v58_v8 }
  0x28   :  { %v87_v7 = vadd.f32 1.0, %v85_v3  ;;  %v90_v11 = vmul.f32 -0.5, %v85_v3  ;;  %v93_v18 = vand.u32 2147483647, %v85_v3 }
  0x29   :  { %v96_v6 = vadd.f32 1.0, %v86_v4  ;;  %v99_v10 = vmul.f32 -0.5, %v86_v4  ;;  %v102_v14 = vand.u32 2147483647, %v86_v4 }
  0x2a   :  { %139 = vadd.xlane.f32.xlu1 %v56_v2  ;;  %128 = vadd.xlane.f32.xlu0 %v61_v5  ;;  %v91_v15 = vadd.f32 1.0, %v90_v11  ;;  %vm94_vm1 = vcmp.lt.f32.partialorder %v93_v18, 0.0004427343 }
  0x2b   :  { %185 = vlog2.f32 %v96_v6  ;;  %v100_v12 = vadd.f32 1.0, %v99_v10  ;;  %vm103_vm0 = vcmp.lt.f32.partialorder %v102_v14, 0.0004427343 }
  0x2c   :  { %187 = vlog2.f32 %v87_v7  ;;  %v92_v23 = vmul.f32 %v91_v15, %v85_v3 }
  0x2d   :  { %v101_v20 = vmul.f32 %v100_v12, %v86_v4 }
  0x2e   :  { %147 = vadd.xlane.f32.xlu1 %v58_v8  ;;  %130 = vadd.xlane.f32.xlu0 %v62_v9 }
  0x30   :  { %v182_v13 = vpop.eup %181 }
  0x31   :  { %v184_v16 = vpop.eup %183  ;;  %v80_v17 = vmul.f32 0.6931472, %v182_v13 }
  0x32   :  { %v82_v19 = vmul.f32 0.6931472, %v184_v16 }
  0x33   :  { %v83_v26 = vmax.f32 %v80_v17, -100.0 }
  0x34   :  { %v84_v22 = vmax.f32 %v82_v19, -100.0 }
  0x35   :  { %v186_v21 = vpop.eup %185  ;;  %v109_v35 = vmul.f32 %v83_v26, %v57_v0 }
  0x36   :  { %v188_v24 = vpop.eup %187  ;;  %v98_v25 = vmul.f32 0.6931472, %v186_v21  ;;  %v110_v32 = vmul.f32 %v84_v22, %v58_v8 }
  0x37   :  { %v89_v28 = vmul.f32 0.6931472, %v188_v24 }
  0x38   :  { %v104_v29 = vsel %vm103_vm0, %v101_v20, %v98_v25 }
  0x39   :  { %v106_v31 = vmax.f32 %v104_v29, -100.0  ;;  %v95_v33 = vsel %vm94_vm1, %v92_v23, %v89_v28 }
  0x3a   :  { %v105_v34 = vmax.f32 %v95_v33, -100.0 }
  0x3b   :  { %v114_v36 = vmul.f32 %v112_v27, %v106_v31 }
  0x3c   :  { %v113_v37 = vmul.f32 %v111_v30, %v105_v34 }
  0x3d   :  { %v116_v38 = vadd.f32 %v114_v36, %v110_v32 }
  0x3e   :  { %v115_v39 = vadd.f32 %v113_v37, %v109_v35 }
  0x3f   :  { %v118_v40 = vsub.f32 0.0, %v116_v38 }
  0x40   :  { %v117_v41 = vsub.f32 0.0, %v115_v39 }
  0x41   :  { %155 = vadd.xlane.f32.xlu1 %v118_v40 }
  0x42   :  { %153 = vadd.xlane.f32.xlu0 %v117_v41 }
  0xb3   :  { %v146_v42 = vpop.xlane.xlu0 %145  ;;  %v138_v43 = vpop.xlane.xlu1 %137 }
  0xb4   :  { %149 = vst.msk [vmem:[%s331_s4] sm:$0xff] %vm132_vm2, %v146_v42  ;;  %141 = vst.msk [vmem:[%s330_s3] sm:$0xff] %vm132_vm2, %v138_v43 }
  0xb7   :  { %v140_v44 = vpop.xlane.xlu1 %139  ;;  %v129_v45 = vpop.xlane.xlu0 %128 }
  0xb8   :  { %142 = vst.msk [vmem:[%s330_s3 + $0x8] sm:$0xff] %vm132_vm2, %v140_v44  ;;  %133 = vst.msk [vmem:[%s329_s2] sm:$0xff] %vm132_vm2, %v129_v45 }
  0xbb   :  { %v148_v46 = vpop.xlane.xlu1 %147  ;;  %v131_v47 = vpop.xlane.xlu0 %130 }
  0xbc   :  { %150 = vst.msk [vmem:[%s331_s4 + $0x8] sm:$0xff] %vm132_vm2, %v148_v46  ;;  %134 = vst.msk [vmem:[%s329_s2 + $0x8] sm:$0xff] %vm132_vm2, %v131_v47 }
  0xce   :  { %v156_v48 = vpop.xlane.xlu1 %155 }
  0xcf   :  { %158 = vst.msk [vmem:[%s332_s5 + $0x8] sm:$0xff] %vm132_vm2, %v156_v48  ;;  %v154_v49 = vpop.xlane.xlu0 %153 }
  0xd0   :  { %157 = vst.msk [vmem:[%s332_s5] sm:$0xff] %vm132_vm2, %v154_v49 }
  0xd1   :  { %175 = vsyncpa [#allocation7], 1 }
  0xd2   :  { %176 = vsyncpa [#allocation9], 1 }

</bundles_post_ra>
